<compile_context>
chip_gen: v5e
topology: v5e:2x2
jax: 0.10.0
libtpu: 0.0.40
codegen_flags: <defaults>
</compile_context>

<pallas_src>
import math

import jax
import jax.numpy as jnp
from jax.experimental import pallas as pl
from jax.experimental.pallas import tpu as pltpu


def task_prompt_kernel(ids_ref, table_ref, out_ref):
    """One grid step = one block of `bb` batch elements.

    ids_ref   : SMEM (B,)            int32 task ids (scalar-prefetched)
    table_ref : VMEM (num_tasks, C)  full embedding table (tiny, resident)
    out_ref   : VMEM (bb, C, H*W)    lane-dense output block
    """
    step = pl.program_id(0)
    bb, C, HW = out_ref.shape
    # bb is a small static constant -> fully unrolled. Each iteration is one
    # (1, C) row gather (dynamic sublane slice on a 512 B table) feeding a
    # lane-dense broadcast + unmasked store; the store slot is the only thing
    # on the critical path.
    for i in range(bb):
        # No bounds check: host-side glue guarantees 0 <= idx < num_tasks
        # (TPU does not runtime-check VMEM refs).
        idx = ids_ref[step * bb + i]          # dynamic scalar index from SMEM
        row = table_ref[pl.ds(idx, 1), :]     # (1, C) embedding row
        out_ref[pl.ds(i, 1), :, :] = jnp.broadcast_to(
            row.reshape(1, C, 1), (1, C, HW))


def task_prompt(task_ids, table, size, *, batch_block=None):
    """task_ids: (B,) int32; table: (num_tasks, C) float32; size: (H, W).

    Returns (B, C, H, W) in the same dtype as `table` (PyTorch parity).
    """
    H, W = size
    HW = H * W
    B = task_ids.shape[0]
    n_tasks, C = table.shape

    if batch_block is None:
        # Whole batch in one grid step for small B; keep steps for larger B so
        # the "parallel" batch axis can still shard across TensorCores (v7x).
        batch_block = B if B <= 8 else math.gcd(B, 8)
    assert B % batch_block == 0, (B, batch_block)
    grid = (B // batch_block,)

    out_flat = pl.pallas_call(
        task_prompt_kernel,
        out_shape=jax.ShapeDtypeStruct((B, C, HW), table.dtype),
        grid_spec=pltpu.PrefetchScalarGridSpec(
            num_scalar_prefetch=1,   # task_ids -> SMEM, passed to kernel + index_maps
            grid=grid,
            in_specs=[
                # whole (tiny) embedding table resident in VMEM every step
                pl.BlockSpec((n_tasks, C), lambda s, ids: (0, 0)),
            ],
            # lane-dense output block: last dim H*W is a multiple of 128
            out_specs=pl.BlockSpec((batch_block, C, HW),
                                   lambda s, ids: (s, 0, 0)),
        ),
        compiler_params=pltpu.CompilerParams(
            dimension_semantics=("parallel",)),
    )(task_ids, table)

    # Free, contiguous metadata reshape back to NCHW.
    return out_flat.reshape(B, C, H, W)


if __name__ == "__main__":
    # Module config (synthetic, deterministic init — no checkpoint load).
    task_list = ["seg", "depth", "normal", "edge"]
    channel = 32
    B, H, W = 2, 16, 16

    key = jax.random.PRNGKey(0)
    # nn.init.kaiming_normal_ on a (num_tasks, channel) weight:
    #   fan_in = channel, gain = sqrt(2)  ->  std = sqrt(2 / channel)
    std = (2.0 / channel) ** 0.5
    table = jax.random.normal(key, (len(task_list), channel), dtype=jnp.float32) * std

    # Forward inputs: a list of task names and a spatial size.
    tasks = ["depth", "seg"]
    task_ids = jnp.array([task_list.index(t) for t in tasks], dtype=jnp.int32)

    out = task_prompt(task_ids, table, (H, W))
    out = jax.block_until_ready(out)

    # Pure-JAX reference check.
    ref = jnp.broadcast_to(table[task_ids][:, :, None, None], (B, channel, H, W))
    assert out.shape == (B, channel, H, W), out.shape
    assert out.dtype == jnp.float32
    assert jnp.allclose(out, ref), "mismatch vs reference"
    print("KERNEL_OK")
</pallas_src>

<mosaic_0001>
module attributes {stable_mosaic.version = 11 : i64} {
  func.func @task_prompt_kernel(%arg0: i32, %arg1: memref<2xi32, #tpu.memory_space<smem>>, %arg2: memref<4x32xf32, #tpu.memory_space<vmem>>, %arg3: memref<2x32x256xf32, #tpu.memory_space<vmem>>) attributes {dimension_semantics = [#tpu.dimension_semantics<parallel>], iteration_bounds = array<i64: 1>, scalar_prefetch = 1 : i64, scratch_operands = 0 : i64, tpu.core_type = #tpu.core_type<tc>, window_params = [{pipeline_mode = #tpu.pipeline_mode<synchronous>, transform_indices = @transform_0, window_bounds = array<i64: 4, 32>}, {transform_indices = @transform_1, window_bounds = array<i64: 2, 32, 256>}]} {
    %c2_i32 = arith.constant 2 : i32
    %0 = arith.muli %arg0, %c2_i32 : i32
    %c0_i32 = arith.constant 0 : i32
    %1 = arith.addi %0, %c0_i32 : i32
    %2 = arith.index_cast %1 : i32 to index
    %3 = memref.load %arg1[%2] : memref<2xi32, #tpu.memory_space<smem>>
    %4 = arith.index_cast %3 : i32 to index
    %c0 = arith.constant 0 : index
    %5 = vector.load %arg2[%4, %c0] : memref<4x32xf32, #tpu.memory_space<vmem>>, vector<1x32xf32>
    %6 = vector.shape_cast %5 : vector<1x32xf32> to vector<1x32x1xf32>
    %7 = vector.shape_cast %6 : vector<1x32x1xf32> to vector<1x32x1xf32>
    %8 = vector.broadcast %7 : vector<1x32x1xf32> to vector<1x32x256xf32>
    %c0_0 = arith.constant 0 : index
    %c0_1 = arith.constant 0 : index
    %c0_2 = arith.constant 0 : index
    %9 = vector.load %arg3[%c0_0, %c0_1, %c0_2] : memref<2x32x256xf32, #tpu.memory_space<vmem>>, vector<1x32x256xf32>
    tpu.vector_store %arg3[%c0_0, %c0_1, %c0_2], %8 {strides = array<i32>} : memref<2x32x256xf32, #tpu.memory_space<vmem>>, vector<1x32x256xf32>,
    %c2_i32_3 = arith.constant 2 : i32
    %10 = arith.muli %arg0, %c2_i32_3 : i32
    %c1_i32 = arith.constant 1 : i32
    %11 = arith.addi %10, %c1_i32 : i32
    %12 = arith.index_cast %11 : i32 to index
    %13 = memref.load %arg1[%12] : memref<2xi32, #tpu.memory_space<smem>>
    %14 = arith.index_cast %13 : i32 to index
    %c0_4 = arith.constant 0 : index
    %15 = vector.load %arg2[%14, %c0_4] : memref<4x32xf32, #tpu.memory_space<vmem>>, vector<1x32xf32>
    %16 = vector.shape_cast %15 : vector<1x32xf32> to vector<1x32x1xf32>
    %17 = vector.shape_cast %16 : vector<1x32x1xf32> to vector<1x32x1xf32>
    %18 = vector.broadcast %17 : vector<1x32x1xf32> to vector<1x32x256xf32>
    %c1 = arith.constant 1 : index
    %c0_5 = arith.constant 0 : index
    %c0_6 = arith.constant 0 : index
    %19 = vector.load %arg3[%c1, %c0_5, %c0_6] : memref<2x32x256xf32, #tpu.memory_space<vmem>>, vector<1x32x256xf32>
    tpu.vector_store %arg3[%c1, %c0_5, %c0_6], %18 {strides = array<i32>} : memref<2x32x256xf32, #tpu.memory_space<vmem>>, vector<1x32x256xf32>,
    return
  }
  func.func @transform_0(%arg0: i32, %arg1: memref<2xi32, #tpu.memory_space<smem>>) -> (i32, i32) {
    %c0_i32 = arith.constant 0 : i32
    %c0_i32_0 = arith.constant 0 : i32
    %c0_i32_1 = arith.constant 0 : i32
    return %c0_i32, %c0_i32_0 : i32, i32
  }
  func.func @transform_1(%arg0: i32, %arg1: memref<2xi32, #tpu.memory_space<smem>>) -> (i32, i32, i32) {
    %c0_i32 = arith.constant 0 : i32
    %c0_i32_0 = arith.constant 0 : i32
    %c0_i32_1 = arith.constant 0 : i32
    return %arg0, %c0_i32, %c0_i32_0 : i32, i32, i32
  }
}

</mosaic_0001>

<bundles_post_ra>
// kernel: tpu_custom_call.1
= control target key start
LH: loop header
LB: loop body
LE: loop exit
PB: predicated region body
PF: predicated region fallthrough
CT: control target
= control target key end

     0   :  { %s211_s12 = smov [#allocation3]   ;;  %s240_s0 = inlined_call_operand.hbm [shape: s32[2], index: 0, kind: input, shape index: {}]   ;;  %s241_s1 = inlined_call_operand.hbm [shape: f32[4,32], index: 1, kind: input, shape index: {}]   ;;  %s242_s2 = inlined_call_operand.hbm [shape: f32[2,32,256], index: 2, kind: output, shape index: {}]  }
   0x1   :  { %s8_s11 = sshll.u32 %s240_s0, 4  ;;  %s9_s11 = int_to_ptr.hbm [resolvable:$true] %s8_s11 }
   0x2   :  { %11 = dma.hbm_to_smem %s9_s11, 16, %s211_s12, [#allocation2] }
   0x3   :  { %205 = dma.done.wait [#allocation2], 16 }
   0x4   :  { %206 = vsyncadd [#allocation2], 4294967280 }
   0x5   :  { %14 = sfence }
   0x6   :  { %15 = vsyncpa [#allocation5], 0 }
   0x7   :  { %16 = vsyncpa [#allocation6], 0  ;;  %s22_s15 = sshll.u32 %s241_s1, 4  ;;  %s212_s16 = smov [#allocation4]   ;;  %s23_s15 = int_to_ptr.hbm [resolvable:$true] %s22_s15 }
   0x8   :  { %s24_s17 = sshll.u32 %s212_s16, 4  ;;  %s25_s17 = int_to_ptr.vmem [resolvable:$true] %s24_s17 }
   0x9   :  { %27 = dma.hbm_to_vmem [thread:$0]  %s23_s15, 64, %s25_s17, [#allocation5]  }
   0xa   :  { %207 = dma.done.wait [#allocation5], 64  }
   0xb   :  { %208 = vsyncadd [#allocation5], 4294967232  ;;  %v37_v0 = vlaneseq  ;;  %s33_s0 = sld [smem:[#allocation3]]  ;;  %s213_s1 = smov [#allocation7]  }
   0xc   :  { %s128_s18 = sld [smem:[#allocation3 + $0x1]]  ;;  %s111_s21 = sshll.u32 %s213_s1, 4  ;;  %s112_s21 = int_to_ptr.vmem [resolvable:$true] %s111_s21 }
   0xd   :  { %v38_v1 = vshrl.u32 %v37_v0, 7  ;;  %s113_s24 = sshll.u32 %s242_s2, 4  ;;  %s214_s25 = smov 256   ;;  %s114_s24 = int_to_ptr.hbm [resolvable:$true] %s113_s24 }
   0xe   :  { %s215_s26 = smov 16  }
   0xf   :  { %v51_v2 = vadd.s32 16, %v38_v1  ;;  %134 = vset.pattern.permute.xlu0 %v38_v1  ;;  %136 = vset.pattern.permute.xlu2 %v38_v1  ;;  %v45_v5 = vadd.s32 8, %v38_v1  ;;  %v57_v6 = vadd.s32 24, %v38_v1 }
  0x11   :  { %137 = vset.pattern.permute.xlu1 %v51_v2  ;;  %s34_s19 = scalar_lea.vmem [#allocation4], %s33_s0 }
  0x12   :  { %s71_s20 = scalar_lea.vmem [#allocation4], %s128_s18  ;;  %v143_v4 = vld [vmem:[%s34_s19] ss:$0 sm:$0xff] }
  0x13   :  { %v144_v3 = vld [vmem:[%s71_s20] ss:$0 sm:$0xff] }
  0x17   :  { %41 = vperm.xlu0 %134, %v143_v4   ;;  %78 = vperm.xlu2 %136, %v144_v3  }
  0x19   :  { %53 = vperm.xlu1 %137, %v143_v4  }
  0x1f   :  { %135 = vset.pattern.permute.xlu0 %v45_v5  ;;  %139 = vset.pattern.permute.xlu2 %v45_v5 }
  0x21   :  { %138 = vset.pattern.permute.xlu1 %v57_v6 }
  0x27   :  { %47 = vperm.xlu0 %135, %v143_v4   ;;  %84 = vperm.xlu2 %139, %v144_v3  }
  0x29   :  { %59 = vperm.xlu1 %138, %v143_v4  }
  0x2f   :  { %141 = vset.pattern.permute.xlu2 %v57_v6  ;;  %142 = vset.pattern.permute.xlu0 %v57_v6 }
  0x31   :  { %140 = vset.pattern.permute.xlu1 %v51_v2 }
  0x37   :  { %96 = vperm.xlu2 %141, %v144_v3  }
  0x39   :  { %90 = vperm.xlu1 %140, %v144_v3  }
  0x71   :  { %v79_v7 = vpop.permute.xlu2 %78 }
  0x72   :  { %99 = vst [vmem:[#allocation7 + $0x40] sm:$0xff] %v79_v7 }
  0x73   :  { %100 = vst [vmem:[#allocation7 + $0x48] sm:$0xff] %v79_v7 }
  0x81   :  { %v85_v8 = vpop.permute.xlu2 %84 }
  0x82   :  { %101 = vst [vmem:[#allocation7 + $0x50] sm:$0xff] %v85_v8 }
  0x83   :  { %102 = vst [vmem:[#allocation7 + $0x58] sm:$0xff] %v85_v8 }
  0x89   :  { %v42_v9 = vpop.permute.xlu0 %41 }
  0x8a   :  { %61 = vst [vmem:[#allocation7] sm:$0xff] %v42_v9 }
  0x8b   :  { %v54_v10 = vpop.permute.xlu1 %53  ;;  %62 = vst [vmem:[#allocation7 + $0x8] sm:$0xff] %v42_v9 }
  0x8c   :  { %65 = vst [vmem:[#allocation7 + $0x20] sm:$0xff] %v54_v10 }
  0x8d   :  { %66 = vst [vmem:[#allocation7 + $0x28] sm:$0xff] %v54_v10 }
  0x91   :  { %v97_v11 = vpop.permute.xlu2 %96 }
  0x92   :  { %105 = vst [vmem:[#allocation7 + $0x70] sm:$0xff] %v97_v11 }
  0x93   :  { %106 = vst [vmem:[#allocation7 + $0x78] sm:$0xff] %v97_v11 }
  0x99   :  { %v48_v12 = vpop.permute.xlu0 %47 }
  0x9a   :  { %63 = vst [vmem:[#allocation7 + $0x10] sm:$0xff] %v48_v12 }
  0x9b   :  { %v60_v13 = vpop.permute.xlu1 %59  ;;  %64 = vst [vmem:[#allocation7 + $0x18] sm:$0xff] %v48_v12 }
  0x9c   :  { %67 = vst [vmem:[#allocation7 + $0x30] sm:$0xff] %v60_v13 }
  0x9d   :  { %68 = vst [vmem:[#allocation7 + $0x38] sm:$0xff] %v60_v13 }
  0xab   :  { %v91_v14 = vpop.permute.xlu1 %90 }
  0xac   :  { %103 = vst [vmem:[#allocation7 + $0x60] sm:$0xff] %v91_v14 }
  0xad   :  { %104 = vst [vmem:[#allocation7 + $0x68] sm:$0xff] %v91_v14 }
  0xae   :  { %119 = dma.vmem_to_hbm [thread:$0]  %s112_s21, 2048, %s114_s24, [#allocation6], %s214_s25, %s214_s25, %s215_s26  }
  0xaf   :  { %209 = dma.done.wait [#allocation6], 2048  }
  0xb0   :  { %210 = vsyncadd [#allocation6], 4294965248 }
  0xb1   :  { %124 = vsyncpa [#allocation5], 1 }
  0xb2   :  { %125 = vsyncpa [#allocation6], 1 }

</bundles_post_ra>
